<compile_context>
chip_gen: v7x
topology: tpu7x:2x2x1
jax: 0.10.0
libtpu: 0.0.40
codegen_flags: <defaults>
</compile_context>

<pallas_src>
import jax
import jax.numpy as jnp
from jax.experimental import pallas as pl
from jax.experimental.pallas import tpu as pltpu


def _round_up(x, m):
    return ((x + m - 1) // m) * m


def make_fused_mlp_kernel(n_layers):
    """Kernel running the fused (block-diagonal) twin-MLP stack on one batch tile."""

    def kernel(x_ref, w_ref, b_ref, out_ref):
        x = x_ref[...]                                   # (TB, P) f32, lane-dense
        for j in range(n_layers):                        # static unrolled loop
            w = w_ref[j]                                 # (P, P)   static slice
            b = b_ref[j]                                 # (1, P)
            x = jnp.dot(x, w, preferred_element_type=jnp.float32) + b
            if j < n_layers - 1:                         # hidden: ReLU, last: Identity
                x = jnp.maximum(x, 0.0)
        out_ref[...] = x.astype(out_ref.dtype)

    return kernel


def _build_fused_slabs(params1, params2, pad):
    """Fuse stack1/stack2 params into padded block-diagonal weight / bias slabs.

    Returns (w_slab, b_slab) with shapes (n_layers, pad, pad) and (n_layers, 1, pad).
    Built with plain XLA ops at trace time (free layout plumbing, not kernel work).
    """
    n_layers = len(params1) // 2
    w_blocks, b_blocks = [], []
    for j in range(n_layers):
        w1, b1 = params1[2 * j], params1[2 * j + 1]      # (k, n), (1, n)
        w2, b2 = params2[2 * j], params2[2 * j + 1]
        k, n = w1.shape
        if j == 0:
            # shared input → just concatenate along the output axis
            wf = jnp.concatenate([w1, w2], axis=1)       # (k, 2n)
            kf = k
        else:
            # block-diagonal so the two stacks stay independent
            z = jnp.zeros((k, n), jnp.float32)
            wf = jnp.concatenate(
                [jnp.concatenate([w1, z], axis=1),
                 jnp.concatenate([z, w2], axis=1)], axis=0)  # (2k, 2n)
            kf = 2 * k
        nf = 2 * n
        wf = jnp.pad(wf.astype(jnp.float32), ((0, pad - kf), (0, pad - nf)))
        bf = jnp.pad(jnp.concatenate([b1, b2], axis=1).astype(jnp.float32),
                     ((0, 0), (0, pad - nf)))
        w_blocks.append(wf)
        b_blocks.append(bf)
    return jnp.stack(w_blocks), jnp.stack(b_blocks)


@jax.jit
def double_network_forward(input1, input2, params1, params2):
    """Pallas-backed DoubleNetwork.forward(input1, input2) -> (out1, out2)."""
    n_layers = len(params1) // 2
    batch, obs_dim = input1.shape
    in_dim = obs_dim + 1
    out_dim = params1[-1].shape[-1]

    # One uniform lane padding for every (fused) layer width.
    fused_dims = [in_dim] + [2 * params1[2 * j].shape[1] for j in range(n_layers)]
    P = _round_up(max(fused_dims), 128)

    # torch: x_ = torch.cat((input1, input2.view(-1, 1)), dim=1).float()  (done in XLA)
    x0 = jnp.concatenate(
        [input1.astype(jnp.float32), input2.reshape(-1, 1).astype(jnp.float32)],
        axis=1,
    )

    # Batch tiling: pad to sublane multiple; shard across TensorCores for big batches.
    B8 = _round_up(batch, 8)
    TB = 256 if B8 >= 256 else B8
    B_pad = _round_up(B8, TB)
    x0 = jnp.pad(x0, ((0, B_pad - batch), (0, P - in_dim)))

    w_slab, b_slab = _build_fused_slabs(params1, params2, P)

    # TODO(synk): if this is reused with hidden >= 2048 or huge batches, set
    # pltpu.CompilerParams(vmem_limit_bytes=...) and re-derive tiling for v7x's 64 MiB VMEM.
    kernel = make_fused_mlp_kernel(n_layers)
    out_pad = pl.pallas_call(
        kernel,
        out_shape=jax.ShapeDtypeStruct((B_pad, P), jnp.float32),
        grid=(B_pad // TB,),
        in_specs=[
            pl.BlockSpec((TB, P), lambda i: (i, 0)),
            pl.BlockSpec((n_layers, P, P), lambda i: (0, 0, 0)),
            pl.BlockSpec((n_layers, 1, P), lambda i: (0, 0, 0)),
        ],
        out_specs=pl.BlockSpec((TB, P), lambda i: (i, 0)),
        compiler_params=pltpu.CompilerParams(dimension_semantics=("parallel",)),
    )(x0, w_slab, b_slab)

    out1 = out_pad[:batch, :out_dim]
    out2 = out_pad[:batch, out_dim:2 * out_dim]
    return out1, out2


def init_basic_network_params(key, sizes):
    """Deterministic Linear params for one stack: [W, b, ...] with W:(in,out), b:(1,out)."""
    params = []
    for j in range(len(sizes) - 1):
        key, kw, kb = jax.random.split(key, 3)
        bound = 1.0 / jnp.sqrt(jnp.float32(sizes[j]))
        w = jax.random.uniform(kw, (sizes[j], sizes[j + 1]), jnp.float32, -bound, bound)
        b = jax.random.uniform(kb, (1, sizes[j + 1]), jnp.float32, -bound, bound)
        params += [w, b]
    return params, key


def reference_forward(input1, input2, params1, params2):
    n_layers = len(params1) // 2
    x = jnp.concatenate(
        [input1.astype(jnp.float32), input2.reshape(-1, 1).astype(jnp.float32)], axis=1
    )

    def run(ps):
        h = x
        for j in range(n_layers):
            h = h @ ps[2 * j] + ps[2 * j + 1]
            if j < n_layers - 1:
                h = jnp.maximum(h, 0.0)
        return h

    return run(params1), run(params2)


if __name__ == "__main__":
    # sizes: first entry = obs_dim + 1 (scalar action concatenated), last = output dim
    obs_dim = 7
    sizes = [obs_dim + 1, 32, 32, 1]
    batch = 8

    key = jax.random.PRNGKey(0)
    key, k1, k2 = jax.random.split(key, 3)
    input1 = jax.random.normal(k1, (batch, obs_dim), jnp.float32)
    input2 = jax.random.normal(k2, (batch,), jnp.float32)  # viewed as (-1, 1) inside forward

    params1, key = init_basic_network_params(key, sizes)
    params2, key = init_basic_network_params(key, sizes)

    out1, out2 = double_network_forward(input1, input2, params1, params2)
    jax.block_until_ready((out1, out2))

    ref1, ref2 = reference_forward(input1, input2, params1, params2)
    assert out1.shape == (batch, sizes[-1]) and out2.shape == (batch, sizes[-1])
    assert jnp.allclose(out1, ref1, atol=1e-5, rtol=1e-5)
    assert jnp.allclose(out2, ref2, atol=1e-5, rtol=1e-5)

    print("KERNEL_OK")
</pallas_src>

<mosaic_0001>
module attributes {stable_mosaic.version = 11 : i64} {
  func.func @kernel(%arg0: i32, %arg1: memref<8x128xf32, #tpu.memory_space<vmem>>, %arg2: memref<3x128x128xf32, #tpu.memory_space<vmem>>, %arg3: memref<3x1x128xf32, #tpu.memory_space<vmem>>, %arg4: memref<8x128xf32, #tpu.memory_space<vmem>>) attributes {dimension_semantics = [#tpu.dimension_semantics<parallel>], iteration_bounds = array<i64: 1>, scalar_prefetch = 0 : i64, scratch_operands = 0 : i64, tpu.core_type = #tpu.core_type<tc>, window_params = [{transform_indices = @transform_0, window_bounds = array<i64: 8, 128>}, {pipeline_mode = #tpu.pipeline_mode<synchronous>, transform_indices = @transform_1, window_bounds = array<i64: 3, 128, 128>}, {pipeline_mode = #tpu.pipeline_mode<synchronous>, transform_indices = @transform_2, window_bounds = array<i64: 3, 1, 128>}, {transform_indices = @transform_3, window_bounds = array<i64: 8, 128>}]} {
    %c0 = arith.constant 0 : index
    %c0_0 = arith.constant 0 : index
    %0 = vector.load %arg1[%c0, %c0_0] : memref<8x128xf32, #tpu.memory_space<vmem>>, vector<8x128xf32>
    %c0_1 = arith.constant 0 : index
    %c0_2 = arith.constant 0 : index
    %c0_3 = arith.constant 0 : index
    %1 = vector.load %arg2[%c0_1, %c0_2, %c0_3] : memref<3x128x128xf32, #tpu.memory_space<vmem>>, vector<1x128x128xf32>
    %2 = vector.shape_cast %1 : vector<1x128x128xf32> to vector<128x128xf32>
    %c0_4 = arith.constant 0 : index
    %c0_5 = arith.constant 0 : index
    %c0_6 = arith.constant 0 : index
    %3 = vector.load %arg3[%c0_4, %c0_5, %c0_6] : memref<3x1x128xf32, #tpu.memory_space<vmem>>, vector<1x1x128xf32>
    %4 = vector.shape_cast %3 : vector<1x1x128xf32> to vector<1x128xf32>
    %cst = arith.constant dense<0.000000e+00> : vector<8x128xf32>
    %5 = tpu.matmul %0, %2, %cst {dimension_numbers = #tpu.dot_dimension_numbers<[1], [0], [0], [1], [0, 0, 1, 1], [], []>} : vector<8x128xf32>, vector<128x128xf32>, vector<8x128xf32> -> vector<8x128xf32>
    %6 = vector.broadcast %4 : vector<1x128xf32> to vector<8x128xf32>
    %7 = arith.addf %5, %6 : vector<8x128xf32>
    %cst_7 = arith.constant 0.000000e+00 : f32
    %8 = vector.broadcast %cst_7 : f32 to vector<8x128xf32>
    %9 = arith.maximumf %7, %8 : vector<8x128xf32>
    %c1 = arith.constant 1 : index
    %c0_8 = arith.constant 0 : index
    %c0_9 = arith.constant 0 : index
    %10 = vector.load %arg2[%c1, %c0_8, %c0_9] : memref<3x128x128xf32, #tpu.memory_space<vmem>>, vector<1x128x128xf32>
    %11 = vector.shape_cast %10 : vector<1x128x128xf32> to vector<128x128xf32>
    %c1_10 = arith.constant 1 : index
    %c0_11 = arith.constant 0 : index
    %c0_12 = arith.constant 0 : index
    %12 = vector.load %arg3[%c1_10, %c0_11, %c0_12] : memref<3x1x128xf32, #tpu.memory_space<vmem>>, vector<1x1x128xf32>
    %13 = vector.shape_cast %12 : vector<1x1x128xf32> to vector<1x128xf32>
    %cst_13 = arith.constant dense<0.000000e+00> : vector<8x128xf32>
    %14 = tpu.matmul %9, %11, %cst_13 {dimension_numbers = #tpu.dot_dimension_numbers<[1], [0], [0], [1], [0, 0, 1, 1], [], []>} : vector<8x128xf32>, vector<128x128xf32>, vector<8x128xf32> -> vector<8x128xf32>
    %15 = vector.broadcast %13 : vector<1x128xf32> to vector<8x128xf32>
    %16 = arith.addf %14, %15 : vector<8x128xf32>
    %cst_14 = arith.constant 0.000000e+00 : f32
    %17 = vector.broadcast %cst_14 : f32 to vector<8x128xf32>
    %18 = arith.maximumf %16, %17 : vector<8x128xf32>
    %c2 = arith.constant 2 : index
    %c0_15 = arith.constant 0 : index
    %c0_16 = arith.constant 0 : index
    %19 = vector.load %arg2[%c2, %c0_15, %c0_16] : memref<3x128x128xf32, #tpu.memory_space<vmem>>, vector<1x128x128xf32>
    %20 = vector.shape_cast %19 : vector<1x128x128xf32> to vector<128x128xf32>
    %c2_17 = arith.constant 2 : index
    %c0_18 = arith.constant 0 : index
    %c0_19 = arith.constant 0 : index
    %21 = vector.load %arg3[%c2_17, %c0_18, %c0_19] : memref<3x1x128xf32, #tpu.memory_space<vmem>>, vector<1x1x128xf32>
    %22 = vector.shape_cast %21 : vector<1x1x128xf32> to vector<1x128xf32>
    %cst_20 = arith.constant dense<0.000000e+00> : vector<8x128xf32>
    %23 = tpu.matmul %18, %20, %cst_20 {dimension_numbers = #tpu.dot_dimension_numbers<[1], [0], [0], [1], [0, 0, 1, 1], [], []>} : vector<8x128xf32>, vector<128x128xf32>, vector<8x128xf32> -> vector<8x128xf32>
    %24 = vector.broadcast %22 : vector<1x128xf32> to vector<8x128xf32>
    %25 = arith.addf %23, %24 : vector<8x128xf32>
    %c0_21 = arith.constant 0 : index
    %c0_22 = arith.constant 0 : index
    %26 = vector.load %arg4[%c0_21, %c0_22] : memref<8x128xf32, #tpu.memory_space<vmem>>, vector<8x128xf32>
    tpu.vector_store %arg4[%c0_21, %c0_22], %25 {strides = array<i32>} : memref<8x128xf32, #tpu.memory_space<vmem>>, vector<8x128xf32>,
    return
  }
  func.func @transform_0(%arg0: i32) -> (i32, i32) {
    %c0_i32 = arith.constant 0 : i32
    %c0_i32_0 = arith.constant 0 : i32
    return %arg0, %c0_i32 : i32, i32
  }
  func.func @transform_1(%arg0: i32) -> (i32, i32, i32) {
    %c0_i32 = arith.constant 0 : i32
    %c0_i32_0 = arith.constant 0 : i32
    %c0_i32_1 = arith.constant 0 : i32
    %c0_i32_2 = arith.constant 0 : i32
    return %c0_i32, %c0_i32_0, %c0_i32_1 : i32, i32, i32
  }
  func.func @transform_2(%arg0: i32) -> (i32, i32, i32) {
    %c0_i32 = arith.constant 0 : i32
    %c0_i32_0 = arith.constant 0 : i32
    %c0_i32_1 = arith.constant 0 : i32
    %c0_i32_2 = arith.constant 0 : i32
    return %c0_i32, %c0_i32_0, %c0_i32_1 : i32, i32, i32
  }
  func.func @transform_3(%arg0: i32) -> (i32, i32) {
    %c0_i32 = arith.constant 0 : i32
    %c0_i32_0 = arith.constant 0 : i32
    return %arg0, %c0_i32 : i32, i32
  }
}

</mosaic_0001>

<bundles_post_ra>
// kernel: double_network_forward.1
= control target key start
LH: loop header
LB: loop body
LE: loop exit
PB: predicated region body
PF: predicated region fallthrough
CT: control target
= control target key end

     0   :  { %v573_v0 = vmov 0.0|0.0   ;;  %vm574_vm0 = vmmov 0   ;;  %v575_v4 = vmov 0.0   ;;  %s785_s1 = inlined_call_operand.vmem [shape: f32[3,128,128], index: 1, kind: input, shape index: {}]   ;;  %s786_s0 = inlined_call_operand.vmem [shape: f32[8,128], index: 0, kind: input, shape index: {}]   ;;  %s787_s2 = inlined_call_operand.vmem [shape: f32[3,1,128], index: 2, kind: input, shape index: {}]   ;;  %s788_s3 = inlined_call_operand.vmem [shape: f32[8,128], index: 3, kind: output, shape index: {}]  }
   0x1   :  { %498 = vmatprep.subr.bf16.mxu0 %v573_v0  ;;  %v15_v1 = vld [vmem:[%s785_s1] sm:$0xff]  ;;  %v16_v2 = vld [vmem:[%s785_s1 + $0x8] sm:$0xff]  ;;  %v17_v3 = vld [vmem:[%s785_s1 + $0x10] sm:$0xff]  ;;  %425 = vmatprep.mubr.msk.f32.mxu0 %vm574_vm0, %v575_v4 }
   0x2   :  { %v499_v5 = vpack.c.bf16 %v16_v2, %v15_v1  ;;  %v18_v6 = vld [vmem:[%s785_s1 + $0x18] sm:$0xff]  ;;  %522 = vmatprep.subr.bf16.mxu1 %v573_v0  ;;  %460 = vmatprep.mubr.msk.f32.mxu1 %vm574_vm0, %v575_v4  ;;  %v19_v8 = vld [vmem:[%s785_s1 + $0x20] sm:$0xff]  ;;  %v20_v9 = vld [vmem:[%s785_s1 + $0x28] sm:$0xff] }
   0x3   :  { %v502_v7 = vpack.c.bf16 %v18_v6, %v17_v3  ;;  %v306_v10 = vld [vmem:[%s785_s1 + $0x80] sm:$0xff]  ;;  %v307_v11 = vld [vmem:[%s785_s1 + $0x88] sm:$0xff]  ;;  %v308_v12 = vld [vmem:[%s785_s1 + $0x90] sm:$0xff]  ;;  %v505_v14 = vpack.c.bf16 %v20_v9, %v19_v8 }
   0x4   :  { %500 = vmatpush3.bf16.msra.mxu0 %v499_v5  ;;  %v309_v13 = vld [vmem:[%s785_s1 + $0x98] sm:$0xff]  ;;  %v523_v15 = vpack.c.bf16 %v307_v11, %v306_v10  ;;  %v21_v16 = vld [vmem:[%s785_s1 + $0x30] sm:$0xff]  ;;  %v310_v19 = vld [vmem:[%s785_s1 + $0xa0] sm:$0xff] }
   0x5   :  { %501 = vmatprep.subr.bf16.mxu0 %v573_v0  ;;  %v22_v17 = vld [vmem:[%s785_s1 + $0x38] sm:$0xff]  ;;  %v526_v18 = vpack.c.bf16 %v309_v13, %v308_v12  ;;  %v311_v20 = vld [vmem:[%s785_s1 + $0xa8] sm:$0xff]  ;;  %v23_v22 = vld [vmem:[%s785_s1 + $0x40] sm:$0xff] }
   0x6   :  { %524 = vmatpush3.bf16.msra.mxu1 %v523_v15  ;;  %v508_v21 = vpack.c.bf16 %v22_v17, %v21_v16  ;;  %v24_v23 = vld [vmem:[%s785_s1 + $0x48] sm:$0xff]  ;;  %v529_v24 = vpack.c.bf16 %v311_v20, %v310_v19  ;;  %v312_v25 = vld [vmem:[%s785_s1 + $0xb0] sm:$0xff]  ;;  %v313_v26 = vld [vmem:[%s785_s1 + $0xb8] sm:$0xff] }
   0x7   :  { %525 = vmatprep.subr.bf16.mxu1 %v573_v0  ;;  %v511_v27 = vpack.c.bf16 %v24_v23, %v23_v22  ;;  %v25_v28 = vld [vmem:[%s785_s1 + $0x50] sm:$0xff]  ;;  %v26_v29 = vld [vmem:[%s785_s1 + $0x58] sm:$0xff]  ;;  %v532_v30 = vpack.c.bf16 %v313_v26, %v312_v25  ;;  %v314_v31 = vld [vmem:[%s785_s1 + $0xc0] sm:$0xff] }
   0x8   :  { %503 = vmatpush3.bf16.msra.mxu0 %v502_v7  ;;  %v315_v32 = vld [vmem:[%s785_s1 + $0xc8] sm:$0xff]  ;;  %v514_v33 = vpack.c.bf16 %v26_v29, %v25_v28  ;;  %v27_v34 = vld [vmem:[%s785_s1 + $0x60] sm:$0xff]  ;;  %v316_v37 = vld [vmem:[%s785_s1 + $0xd0] sm:$0xff] }
   0x9   :  { %504 = vmatprep.subr.bf16.mxu0 %v573_v0  ;;  %v28_v35 = vld [vmem:[%s785_s1 + $0x68] sm:$0xff]  ;;  %v535_v36 = vpack.c.bf16 %v315_v32, %v314_v31  ;;  %v317_v38 = vld [vmem:[%s785_s1 + $0xd8] sm:$0xff]  ;;  %v29_v40 = vld [vmem:[%s785_s1 + $0x70] sm:$0xff] }
   0xa   :  { %527 = vmatpush3.bf16.msra.mxu1 %v526_v18  ;;  %v517_v39 = vpack.c.bf16 %v28_v35, %v27_v34  ;;  %v30_v41 = vld [vmem:[%s785_s1 + $0x78] sm:$0xff]  ;;  %v538_v42 = vpack.c.bf16 %v317_v38, %v316_v37  ;;  %v318_v43 = vld [vmem:[%s785_s1 + $0xe0] sm:$0xff]  ;;  %v319_v44 = vld [vmem:[%s785_s1 + $0xe8] sm:$0xff] }
   0xb   :  { %528 = vmatprep.subr.bf16.mxu1 %v573_v0  ;;  %v520_v45 = vpack.c.bf16 %v30_v41, %v29_v40  ;;  %v541_v46 = vpack.c.bf16 %v319_v44, %v318_v43  ;;  %v14_v47 = vld [vmem:[%s786_s0] sm:$0xff]  ;;  %v320_v48 = vld [vmem:[%s785_s1 + $0xf0] sm:$0xff]  ;;  %v321_v49 = vld [vmem:[%s785_s1 + $0xf8] sm:$0xff] }
   0xc   :  { %506 = vmatpush3.bf16.msra.mxu0 %v505_v14  ;;  %v544_v50 = vpack.c.bf16 %v321_v49, %v320_v48  ;;  %v324_v51 = vld [vmem:[%s785_s1 + $0x100] sm:$0xff]  ;;  %v325_v52 = vld [vmem:[%s785_s1 + $0x108] sm:$0xff]  ;;  %v326_v53 = vld [vmem:[%s785_s1 + $0x110] sm:$0xff] }
   0xd   :  { %507 = vmatprep.subr.bf16.mxu0 %v573_v0  ;;  %v547_v54 = vpack.c.bf16 %v325_v52, %v324_v51  ;;  %v327_v55 = vld [vmem:[%s785_s1 + $0x118] sm:$0xff]  ;;  %v328_v57 = vld [vmem:[%s785_s1 + $0x120] sm:$0xff]  ;;  %v329_v58 = vld [vmem:[%s785_s1 + $0x128] sm:$0xff] }
   0xe   :  { %530 = vmatpush3.bf16.msra.mxu1 %v529_v24  ;;  %v550_v56 = vpack.c.bf16 %v327_v55, %v326_v53  ;;  %v553_v59 = vpack.c.bf16 %v329_v58, %v328_v57  ;;  %v330_v60 = vld [vmem:[%s785_s1 + $0x130] sm:$0xff]  ;;  %v331_v61 = vld [vmem:[%s785_s1 + $0x138] sm:$0xff]  ;;  %v332_v63 = vld [vmem:[%s785_s1 + $0x140] sm:$0xff] }
   0xf   :  { %531 = vmatprep.subr.bf16.mxu1 %v573_v0  ;;  %v556_v62 = vpack.c.bf16 %v331_v61, %v330_v60  ;;  %v333_v1 = vld [vmem:[%s785_s1 + $0x148] sm:$0xff]  ;;  %v334_v3 = vld [vmem:[%s785_s1 + $0x150] sm:$0xff]  ;;  %v336_v6 = vld [vmem:[%s785_s1 + $0x160] sm:$0xff] }
  0x10   :  { %509 = vmatpush3.bf16.msra.mxu0 %v508_v21  ;;  %v559_v2 = vpack.c.bf16 %v333_v1, %v332_v63  ;;  %v337_v7 = vld [vmem:[%s785_s1 + $0x168] sm:$0xff]  ;;  %v305_v9 = vld [vmem:[%s787_s2] ss:$0 sm:$0xff]  ;;  %v338_v14 = vld [vmem:[%s785_s1 + $0x170] sm:$0xff] }
  0x11   :  { %510 = vmatprep.subr.bf16.mxu0 %v573_v0  ;;  %v565_v8 = vpack.c.bf16 %v337_v7, %v336_v6  ;;  %v339_v15 = vld [vmem:[%s785_s1 + $0x178] sm:$0xff]  ;;  %v341_v21 = vld [vmem:[%s787_s2 + $0x2] ss:$0 sm:$0xff] }
  0x12   :  { %533 = vmatpush3.bf16.msra.mxu1 %v532_v30  ;;  %v568_v16 = vpack.c.bf16 %v339_v15, %v338_v14 }
  0x13   :  { %534 = vmatprep.subr.bf16.mxu1 %v573_v0 }
  0x14   :  { %512 = vmatpush3.bf16.msra.mxu0 %v511_v27 }
  0x15   :  { %513 = vmatprep.subr.bf16.mxu0 %v573_v0 }
  0x16   :  { %536 = vmatpush3.bf16.msra.mxu1 %v535_v36 }
  0x17   :  { %537 = vmatprep.subr.bf16.mxu1 %v573_v0 }
  0x18   :  { %515 = vmatpush3.bf16.msra.mxu0 %v514_v33 }
  0x19   :  { %516 = vmatprep.subr.bf16.mxu0 %v573_v0 }
  0x1a   :  { %539 = vmatpush3.bf16.msra.mxu1 %v538_v42 }
  0x1b   :  { %540 = vmatprep.subr.bf16.mxu1 %v573_v0 }
  0x1c   :  { %518 = vmatpush3.bf16.msra.mxu0 %v517_v39 }
  0x1d   :  { %519 = vmatprep.subr.bf16.mxu0 %v573_v0 }
  0x1e   :  { %542 = vmatpush3.bf16.msra.mxu1 %v541_v46 }
  0x1f   :  { %543 = vmatprep.subr.bf16.mxu1 %v573_v0 }
  0x20   :  { %521 = vmatpush3.bf16.msra.mxu0 %v520_v45 }
  0x21   :  { %546 = vmatprep.subr.bf16.mxu0 %v573_v0 }
  0x22   :  { %545 = vmatpush3.bf16.msra.mxu1 %v544_v50 }
  0x23   :  { %426 = vmatmul.mubr.f32.vlgmr.msra.gmra.mrb[0].mxu0 %v14_v47 }
  0x24   :  { %495 = vmatprep.mubr.msk.f32.mxu0 %vm574_vm0, %v575_v4  ;;  %548 = vmatpush3.bf16.msra.mxu0 %v547_v54  ;;  %v335_v4 = vld [vmem:[%s785_s1 + $0x158] sm:$0xff] }
  0x25   :  { %549 = vmatprep.subr.bf16.mxu0 %v573_v0  ;;  %v562_v5 = vpack.c.bf16 %v335_v4, %v334_v3 }
  0x28   :  { %551 = vmatpush3.bf16.msra.mxu0 %v550_v56 }
  0x29   :  { %552 = vmatprep.subr.bf16.mxu0 %v573_v0 }
  0x2c   :  { %554 = vmatpush3.bf16.msra.mxu0 %v553_v59 }
  0x2d   :  { %555 = vmatprep.subr.bf16.mxu0 %v573_v0 }
  0x30   :  { %557 = vmatpush3.bf16.msra.mxu0 %v556_v62 }
  0x31   :  { %558 = vmatprep.subr.bf16.mxu0 %v573_v0 }
  0x34   :  { %560 = vmatpush3.bf16.msra.mxu0 %v559_v2 }
  0x35   :  { %561 = vmatprep.subr.bf16.mxu0 %v573_v0 }
  0x38   :  { %563 = vmatpush3.bf16.msra.mxu0 %v562_v5 }
  0x39   :  { %564 = vmatprep.subr.bf16.mxu0 %v573_v0 }
  0x3c   :  { %566 = vmatpush3.bf16.msra.mxu0 %v565_v8 }
  0x3d   :  { %567 = vmatprep.subr.bf16.mxu0 %v573_v0  ;;  %v323_v0 = vld [vmem:[%s787_s2 + $0x1] ss:$0 sm:$0xff] }
  0x40   :  { %569 = vmatpush3.bf16.msra.mxu0 %v568_v16 }
  0xf6   :  { %v104_v10 = vpop.f32.mrb[0].mxu0 }
  0xf7   :  { %v105_v11 = vadd.f32 %v305_v9, %v104_v10  ;;  %v427_v12 = vpop.f32.mrb[1].mxu0 }
  0xf9   :  { %v108_v13 = vmax.f32 %v105_v11, 0.0 }
  0xfb   :  { %461 = vmatmul.mubr.f32.vlgmr.msra.gmra.mrb[0].mxu1 %v108_v13 }
 0x1ce   :  { %v200_v17 = vpop.f32.mrb[0].mxu1 }
 0x1cf   :  { %v201_v18 = vadd.f32 %v323_v0, %v200_v17  ;;  %v462_v19 = vpop.f32.mrb[1].mxu1 }
 0x1d1   :  { %v204_v20 = vmax.f32 %v201_v18, 0.0 }
 0x1d3   :  { %496 = vmatmul.mubr.f32.vlgmr.msra.gmra.mrb[2].mxu0 %v204_v20 }
 0x2a6   :  { %v296_v22 = vpop.f32.mrb[2].mxu0 }
 0x2a7   :  { %v297_v23 = vadd.f32 %v341_v21, %v296_v22  ;;  %v497_v24 = vpop.f32.mrb[3].mxu0 }
 0x2a9   :  { %300 = vst [vmem:[%s788_s3] sm:$0xff] %v297_v23 }

</bundles_post_ra>
